<compile_context>
chip_gen: v7x
topology: tpu7x:2x2x1
jax: 0.10.0
libtpu: 0.0.40
codegen_flags: <defaults>
</compile_context>

<pallas_src>
import functools
import math

import jax
import jax.numpy as jnp
from jax.experimental import pallas as pl
from jax.experimental.pallas import tpu as pltpu


def _layernorm_kernel(x_ref, gamma_ref, beta_ref, seg_ref, segt_ref, o_ref,
                      *, eps, d_hid, fold):
    """x_ref: (R, fold*d_hid); gamma/beta: (1, fold*d_hid);
       seg: (fold*d_hid, fold) 0/1; segt: (fold, fold*d_hid) 0/1."""
    x = x_ref[...].astype(jnp.float32)
    gamma = gamma_ref[...].astype(jnp.float32)
    beta = beta_ref[...].astype(jnp.float32)
    seg = seg_ref[...]

    inv_n = jnp.float32(1.0 / d_hid)
    inv_nm1 = (jnp.float32(1.0 / (d_hid - 1)) if d_hid > 1
               else jnp.float32(float("nan")))

    # Per-segment row sums on the otherwise-idle MXU (vex slot, not XLU/VPU).
    mean = jnp.dot(x, seg, preferred_element_type=jnp.float32) * inv_n   # (R, fold)

    if fold == 1:
        centered = x - mean                                   # (R,1) lane-broadcast
        var = jnp.dot(centered * centered, seg,
                      preferred_element_type=jnp.float32) * inv_nm1      # (R, 1)
        denom = jnp.sqrt(var) + jnp.float32(eps)
        inv = pl.reciprocal(denom, approx=True)               # EUP vrcp
        inv = inv * (2.0 - denom * inv)                       # 1 NR step (narrow col)
        o_ref[...] = (gamma * (centered * inv) + beta).astype(o_ref.dtype)
    else:
        segt = segt_ref[...]
        mean_full = jnp.dot(mean, segt, preferred_element_type=jnp.float32)
        centered = x - mean_full                              # x dead after this
        var = jnp.dot(centered * centered, seg,
                      preferred_element_type=jnp.float32) * inv_nm1      # (R, fold)
        denom = jnp.sqrt(var) + jnp.float32(eps)
        inv = pl.reciprocal(denom, approx=True)               # EUP vrcp
        inv = inv * (2.0 - denom * inv)                       # 1 NR step (narrow col)
        inv_full = jnp.dot(inv, segt, preferred_element_type=jnp.float32)
        o_ref[...] = (gamma * (centered * inv_full) + beta).astype(o_ref.dtype)


def _vmem_budget():
    """(target f32 block bytes, vmem_limit_bytes), sized per TPU generation."""
    try:
        cap = pltpu.get_tpu_info().vmem_capacity_bytes
    except Exception:
        cap = 64 * 1024 * 1024                    # conservative (v7x-sized) fallback
    if cap >= 96 * 1024 * 1024:                   # v5e / v6e: 128 MiB per TC
        return 8 * 1024 * 1024, 100 * 1024 * 1024
    return 4 * 1024 * 1024, 52 * 1024 * 1024      # v7x: 64 MiB per TC


def layer_normalization(z, gamma, beta, eps=1e-3):
    """Pallas implementation of LayerNormalization.forward (normalize dim=-1)."""
    orig_shape = z.shape
    d_hid = orig_shape[-1]
    x2d = z.reshape(-1, d_hid)
    rows = x2d.shape[0]

    # Lane-dense folding: pack `fold` independent rows into one lane row whose
    # width is a multiple of 128 (unmasked full-lane stores).  Only applied when
    # the reshape is exact, so no padding copy is ever needed.
    fold = 128 // math.gcd(d_hid, 128)
    if fold > 1 and rows % fold != 0:
        fold = 1            # fall back rather than add a zero-pad HBM pass

    lane_w = fold * d_hid
    n_rows = rows // fold
    xf = x2d.reshape(n_rows, lane_w)

    gamma_row = gamma.reshape(1, d_hid)
    beta_row = beta.reshape(1, d_hid)
    if fold > 1:
        gamma_row = jnp.tile(gamma_row, (1, fold))
        beta_row = jnp.tile(beta_row, (1, fold))

    # Segment reduce / broadcast matrices, built ONCE (VMEM-resident constants).
    seg = (jnp.arange(lane_w, dtype=jnp.int32)[:, None] // d_hid
           == jnp.arange(fold, dtype=jnp.int32)[None, :]).astype(jnp.float32)
    seg_t = seg.T

    # ---- generation-aware row-tile sizing ---------------------------------
    target_block_bytes, vmem_limit = _vmem_budget()
    itemsize = jnp.dtype(z.dtype).itemsize
    sub = max(8, 32 // itemsize)                  # sublane pack: 8 f32 / 16 bf16 / 32 i8
    target_rows = max(sub, (target_block_bytes // (lane_w * 4)) // sub * sub)
    # Keep >= ~4 grid steps on mid-sized inputs (megacore sharding + pipelining).
    cap_rows = max(sub, pl.cdiv(pl.cdiv(n_rows, 4), sub) * sub)
    row_tile = min(target_rows, cap_rows)
    if row_tile >= n_rows:
        row_tile = n_rows                         # single full-extent block
    grid = (pl.cdiv(n_rows, row_tile),)

    # Guard: double-buffered in/out blocks + ~3 f32 temporaries must fit VMEM.
    approx_footprint = row_tile * lane_w * (4 * itemsize + 3 * 4)
    if approx_footprint > vmem_limit:
        raise ValueError(
            f"d_hid={d_hid} too large for the VMEM budget "
            f"(~{approx_footprint} B needed > {vmem_limit} B limit).")

    kernel = functools.partial(_layernorm_kernel, eps=eps, d_hid=d_hid, fold=fold)

    outf = pl.pallas_call(
        kernel,
        out_shape=jax.ShapeDtypeStruct((n_rows, lane_w), z.dtype),
        grid_spec=pltpu.PrefetchScalarGridSpec(
            num_scalar_prefetch=0,
            grid=grid,
            in_specs=[
                pl.BlockSpec((row_tile, lane_w), lambda i: (i, 0)),
                pl.BlockSpec((1, lane_w), lambda i: (0, 0)),
                pl.BlockSpec((1, lane_w), lambda i: (0, 0)),
                pl.BlockSpec((lane_w, fold), lambda i: (0, 0)),
                pl.BlockSpec((fold, lane_w), lambda i: (0, 0)),
            ],
            out_specs=pl.BlockSpec((row_tile, lane_w), lambda i: (i, 0)),
        ),
        compiler_params=pltpu.CompilerParams(
            dimension_semantics=("parallel",),
            vmem_limit_bytes=vmem_limit,
        ),
    )(xf, gamma_row, beta_row, seg, seg_t)

    return outf.reshape(orig_shape)


if __name__ == "__main__":
    eps = 1e-3

    def reference(z, gamma, beta, eps):
        # Matches torch: unbiased (N-1) std, eps added to std (not variance).
        mean = jnp.mean(z, axis=-1, keepdims=True)
        var = jnp.sum((z - mean) ** 2, axis=-1, keepdims=True) / (z.shape[-1] - 1)
        return gamma * ((z - mean) / (jnp.sqrt(var) + eps)) + beta

    # --- primary case, consistent with the module: batch=2, seq=8, hidden=32
    batch, seq, d_hid = 2, 8, 32
    key = jax.random.PRNGKey(0)
    z = jax.random.normal(key, (batch, seq, d_hid), dtype=jnp.float32)
    gamma = jnp.ones((d_hid,), dtype=jnp.float32)      # module __init__ values
    beta = jnp.zeros((d_hid,), dtype=jnp.float32)

    out = jax.block_until_ready(layer_normalization(z, gamma, beta, eps=eps))
    assert out.shape == z.shape and out.dtype == z.dtype
    assert jnp.allclose(out, reference(z, gamma, beta, eps), atol=1e-5, rtol=1e-5), \
        "mismatch vs reference (lane-dense fold path)"

    # --- extra coverage: fold==1 MXU-reduction path, multi-block grid with a
    #     ragged tail block (rows=18 not a multiple of the row tile).
    #     Tolerance allows MXU f32-emulation rounding in the reductions.
    z2 = jax.random.normal(jax.random.PRNGKey(1), (2, 9, 256), dtype=jnp.float32)
    g2 = 1.0 + 0.1 * jax.random.normal(jax.random.PRNGKey(2), (256,), jnp.float32)
    b2 = 0.1 * jax.random.normal(jax.random.PRNGKey(3), (256,), jnp.float32)
    out2 = jax.block_until_ready(layer_normalization(z2, g2, b2, eps=eps))
    assert jnp.allclose(out2, reference(z2, g2, b2, eps), atol=1e-4, rtol=1e-5), \
        "mismatch vs reference (fold==1 / ragged tail path)"

    # --- extra coverage: generalized fold (d_hid=48 -> fold=8, lane width 384).
    z3 = jax.random.normal(jax.random.PRNGKey(4), (2, 8, 48), dtype=jnp.float32)
    g3 = 1.0 + 0.1 * jax.random.normal(jax.random.PRNGKey(5), (48,), jnp.float32)
    b3 = 0.1 * jax.random.normal(jax.random.PRNGKey(6), (48,), jnp.float32)
    out3 = jax.block_until_ready(layer_normalization(z3, g3, b3, eps=eps))
    assert jnp.allclose(out3, reference(z3, g3, b3, eps), atol=1e-4, rtol=1e-5), \
        "mismatch vs reference (generalized fold path)"

    print("KERNEL_OK")
</pallas_src>

<mosaic_0001>
module attributes {stable_mosaic.version = 11 : i64} {
  func.func @_layernorm_kernel(%arg0: i32, %arg1: memref<4x128xf32, #tpu.memory_space<vmem>>, %arg2: memref<1x128xf32, #tpu.memory_space<vmem>>, %arg3: memref<1x128xf32, #tpu.memory_space<vmem>>, %arg4: memref<128x4xf32, #tpu.memory_space<vmem>>, %arg5: memref<4x128xf32, #tpu.memory_space<vmem>>, %arg6: memref<4x128xf32, #tpu.memory_space<vmem>>) attributes {dimension_semantics = [#tpu.dimension_semantics<parallel>], iteration_bounds = array<i64: 1>, scalar_prefetch = 0 : i64, scratch_operands = 0 : i64, tpu.core_type = #tpu.core_type<tc>, window_params = [{transform_indices = @transform_0, window_bounds = array<i64: 4, 128>}, {pipeline_mode = #tpu.pipeline_mode<synchronous>, transform_indices = @transform_1, window_bounds = array<i64: 1, 128>}, {pipeline_mode = #tpu.pipeline_mode<synchronous>, transform_indices = @transform_2, window_bounds = array<i64: 1, 128>}, {pipeline_mode = #tpu.pipeline_mode<synchronous>, transform_indices = @transform_3, window_bounds = array<i64: 128, 4>}, {pipeline_mode = #tpu.pipeline_mode<synchronous>, transform_indices = @transform_4, window_bounds = array<i64: 4, 128>}, {transform_indices = @transform_5, window_bounds = array<i64: 4, 128>}]} {
    %c0 = arith.constant 0 : index
    %c0_0 = arith.constant 0 : index
    %0 = vector.load %arg1[%c0, %c0_0] : memref<4x128xf32, #tpu.memory_space<vmem>>, vector<4x128xf32>
    %c0_1 = arith.constant 0 : index
    %c0_2 = arith.constant 0 : index
    %1 = vector.load %arg2[%c0_1, %c0_2] : memref<1x128xf32, #tpu.memory_space<vmem>>, vector<1x128xf32>
    %c0_3 = arith.constant 0 : index
    %c0_4 = arith.constant 0 : index
    %2 = vector.load %arg3[%c0_3, %c0_4] : memref<1x128xf32, #tpu.memory_space<vmem>>, vector<1x128xf32>
    %c0_5 = arith.constant 0 : index
    %c0_6 = arith.constant 0 : index
    %3 = vector.load %arg4[%c0_5, %c0_6] : memref<128x4xf32, #tpu.memory_space<vmem>>, vector<128x4xf32>
    %cst = arith.constant dense<0.000000e+00> : vector<4x4xf32>
    %4 = tpu.matmul %0, %3, %cst {dimension_numbers = #tpu.dot_dimension_numbers<[1], [0], [0], [1], [0, 0, 1, 1], [], []>} : vector<4x128xf32>, vector<128x4xf32>, vector<4x4xf32> -> vector<4x4xf32>
    %cst_7 = arith.constant 3.125000e-02 : f32
    %5 = vector.broadcast %cst_7 : f32 to vector<4x4xf32>
    %6 = arith.mulf %4, %5 : vector<4x4xf32>
    %c0_8 = arith.constant 0 : index
    %c0_9 = arith.constant 0 : index
    %7 = vector.load %arg5[%c0_8, %c0_9] : memref<4x128xf32, #tpu.memory_space<vmem>>, vector<4x128xf32>
    %cst_10 = arith.constant dense<0.000000e+00> : vector<4x128xf32>
    %8 = tpu.matmul %6, %7, %cst_10 {dimension_numbers = #tpu.dot_dimension_numbers<[1], [0], [0], [1], [0, 0, 1, 1], [], []>} : vector<4x4xf32>, vector<4x128xf32>, vector<4x128xf32> -> vector<4x128xf32>
    %9 = arith.subf %0, %8 : vector<4x128xf32>
    %10 = arith.mulf %9, %9 : vector<4x128xf32>
    %cst_11 = arith.constant dense<0.000000e+00> : vector<4x4xf32>
    %11 = tpu.matmul %10, %3, %cst_11 {dimension_numbers = #tpu.dot_dimension_numbers<[1], [0], [0], [1], [0, 0, 1, 1], [], []>} : vector<4x128xf32>, vector<128x4xf32>, vector<4x4xf32> -> vector<4x4xf32>
    %cst_12 = arith.constant 0.0322580636 : f32
    %12 = vector.broadcast %cst_12 : f32 to vector<4x4xf32>
    %13 = arith.mulf %11, %12 : vector<4x4xf32>
    %14 = math.sqrt %13 : vector<4x4xf32>
    %cst_13 = arith.constant 1.000000e-03 : f32
    %15 = vector.broadcast %cst_13 : f32 to vector<4x4xf32>
    %16 = arith.addf %14, %15 : vector<4x4xf32>
    %17 = tpu.reciprocal %16 {approx = true} : vector<4x4xf32> -> vector<4x4xf32>
    %18 = arith.mulf %16, %17 : vector<4x4xf32>
    %cst_14 = arith.constant 2.000000e+00 : f32
    %19 = vector.broadcast %cst_14 : f32 to vector<4x4xf32>
    %20 = arith.subf %19, %18 : vector<4x4xf32>
    %21 = arith.mulf %17, %20 : vector<4x4xf32>
    %cst_15 = arith.constant dense<0.000000e+00> : vector<4x128xf32>
    %22 = tpu.matmul %21, %7, %cst_15 {dimension_numbers = #tpu.dot_dimension_numbers<[1], [0], [0], [1], [0, 0, 1, 1], [], []>} : vector<4x4xf32>, vector<4x128xf32>, vector<4x128xf32> -> vector<4x128xf32>
    %23 = arith.mulf %9, %22 : vector<4x128xf32>
    %24 = vector.broadcast %1 : vector<1x128xf32> to vector<4x128xf32>
    %25 = arith.mulf %24, %23 : vector<4x128xf32>
    %26 = vector.broadcast %2 : vector<1x128xf32> to vector<4x128xf32>
    %27 = arith.addf %25, %26 : vector<4x128xf32>
    %c0_16 = arith.constant 0 : index
    %c0_17 = arith.constant 0 : index
    %28 = vector.load %arg6[%c0_16, %c0_17] : memref<4x128xf32, #tpu.memory_space<vmem>>, vector<4x128xf32>
    tpu.vector_store %arg6[%c0_16, %c0_17], %27 {strides = array<i32>} : memref<4x128xf32, #tpu.memory_space<vmem>>, vector<4x128xf32>,
    return
  }
  func.func @transform_0(%arg0: i32) -> (i32, i32) {
    %c0_i32 = arith.constant 0 : i32
    %c0_i32_0 = arith.constant 0 : i32
    return %arg0, %c0_i32 : i32, i32
  }
  func.func @transform_1(%arg0: i32) -> (i32, i32) {
    %c0_i32 = arith.constant 0 : i32
    %c0_i32_0 = arith.constant 0 : i32
    %c0_i32_1 = arith.constant 0 : i32
    return %c0_i32, %c0_i32_0 : i32, i32
  }
  func.func @transform_2(%arg0: i32) -> (i32, i32) {
    %c0_i32 = arith.constant 0 : i32
    %c0_i32_0 = arith.constant 0 : i32
    %c0_i32_1 = arith.constant 0 : i32
    return %c0_i32, %c0_i32_0 : i32, i32
  }
  func.func @transform_3(%arg0: i32) -> (i32, i32) {
    %c0_i32 = arith.constant 0 : i32
    %c0_i32_0 = arith.constant 0 : i32
    %c0_i32_1 = arith.constant 0 : i32
    return %c0_i32, %c0_i32_0 : i32, i32
  }
  func.func @transform_4(%arg0: i32) -> (i32, i32) {
    %c0_i32 = arith.constant 0 : i32
    %c0_i32_0 = arith.constant 0 : i32
    %c0_i32_1 = arith.constant 0 : i32
    return %c0_i32, %c0_i32_0 : i32, i32
  }
  func.func @transform_5(%arg0: i32) -> (i32, i32) {
    %c0_i32 = arith.constant 0 : i32
    %c0_i32_0 = arith.constant 0 : i32
    return %arg0, %c0_i32 : i32, i32
  }
}

</mosaic_0001>

<bundles_post_ra>
// kernel: tpu_custom_call.1
= control target key start
LH: loop header
LB: loop body
LE: loop exit
PB: predicated region body
PF: predicated region fallthrough
CT: control target
= control target key end

     0   :  { %v582_v3 = vmov 0.0|0.0   ;;  %vm583_vm0 = vmmov 0   ;;  %v584_v6 = vmov 0.0   ;;  %s710_s0 = inlined_call_operand.vmem [shape: f32[4,128], index: 0, kind: input, shape index: {}]   ;;  %s711_s1 = inlined_call_operand.vmem [shape: f32[1,128], index: 1, kind: input, shape index: {}]   ;;  %s712_s2 = inlined_call_operand.vmem [shape: f32[1,128], index: 2, kind: input, shape index: {}]   ;;  %s713_s3 = inlined_call_operand.vmem [shape: f32[128,4], index: 3, kind: input, shape index: {}]   ;;  %s714_s4 = inlined_call_operand.vmem [shape: f32[4,128], index: 4, kind: input, shape index: {}]   ;;  %s715_s5 = inlined_call_operand.hbm [shape: f32[4,128], index: 5, kind: output, shape index: {}]  }
   0x1   :  { %v24_v0 = vld [vmem:[%s713_s3] sm:$0xff]  ;;  %v25_v1 = vld [vmem:[%s713_s3 + $0x8] sm:$0xff]  ;;  %v26_v2 = vld [vmem:[%s713_s3 + $0x10] sm:$0xff]  ;;  %502 = vmatprep.subr.bf16.mxu0 %v582_v3  ;;  %454 = vmatprep.mubr.msk.f32.mxu0 %vm583_vm0, %v584_v6 }
   0x2   :  { %v503_v4 = vpack.c.bf16 %v25_v1, %v24_v0  ;;  %v27_v5 = vld [vmem:[%s713_s3 + $0x18] sm:$0xff]  ;;  %457 = vmatprep.subr.mxu1 %v584_v6  ;;  %459 = vmatprep.mubr.msk.f32.mxu1 %vm583_vm0, %v584_v6  ;;  %v28_v8 = vld [vmem:[%s713_s3 + $0x20] sm:$0xff]  ;;  %v29_v9 = vld [vmem:[%s713_s3 + $0x28] sm:$0xff] }
   0x3   :  { %v506_v7 = vpack.c.bf16 %v27_v5, %v26_v2 }
   0x4   :  { %504 = vmatpush3.bf16.msra.mxu0 %v503_v4 }
   0x5   :  { %505 = vmatprep.subr.bf16.mxu0 %v582_v3 }
   0x6   :  { %10 = vsyncpa [#allocation3], 0  ;;  %v509_v10 = vpack.c.bf16 %v29_v9, %v28_v8  ;;  %v30_v11 = vld [vmem:[%s713_s3 + $0x30] sm:$0xff]  ;;  %v31_v12 = vld [vmem:[%s713_s3 + $0x38] sm:$0xff]  ;;  %vm116_vm1 = vcmask 1043456   ;;  %vm112_vm2 = vcmask 31744  }
   0x7   :  { %v512_v13 = vpack.c.bf16 %v31_v12, %v30_v11  ;;  %v32_v14 = vld [vmem:[%s713_s3 + $0x40] sm:$0xff]  ;;  %v33_v15 = vld [vmem:[%s713_s3 + $0x48] sm:$0xff]  ;;  %v34_v17 = vld [vmem:[%s713_s3 + $0x50] sm:$0xff]  ;;  %s585_s30 = smov [#allocation2]  }
   0x8   :  { %507 = vmatpush3.bf16.msra.mxu0 %v506_v7  ;;  %v515_v16 = vpack.c.bf16 %v33_v15, %v32_v14  ;;  %v35_v18 = vld [vmem:[%s713_s3 + $0x58] sm:$0xff]  ;;  %v36_v20 = vld [vmem:[%s713_s3 + $0x60] sm:$0xff]  ;;  %v37_v21 = vld [vmem:[%s713_s3 + $0x68] sm:$0xff]  ;;  %s370_s6 = sshll.u32 %s585_s30, 4  ;;  %s371_s6 = int_to_ptr.vmem [resolvable:$true] %s370_s6 }
   0x9   :  { %508 = vmatprep.subr.bf16.mxu0 %v582_v3  ;;  %v518_v19 = vpack.c.bf16 %v35_v18, %v34_v17  ;;  %v521_v22 = vpack.c.bf16 %v37_v21, %v36_v20  ;;  %v38_v23 = vld [vmem:[%s713_s3 + $0x70] sm:$0xff]  ;;  %v39_v24 = vld [vmem:[%s713_s3 + $0x78] sm:$0xff]  ;;  %v21_v26 = vld [vmem:[%s710_s0] sm:$0xf]  ;;  %s558_s7 = scalar_lea.vmem %s371_s6, 64  ;;  %p563_p1 = scmp.lt.s32.totalorder %s371_s6, %s371_s6 }
   0xa   :  { %v524_v25 = vpack.c.bf16 %v39_v24, %v38_v23  ;;  %v111_v27 = vld [vmem:[%s714_s4] sm:$0xf]  ;;  %p559_p0 = scmp.ne.s32.totalorder %s371_s6, %s558_s7  ;;  %p564_p2 = scmp.lt.s32.totalorder %s558_s7, %s558_s7 }
   0xb   :  { %458 = vmatpush3.msk.msra.mxu1 %vm116_vm1, %v111_v27  ;;  %v382_v48 = vld [vmem:[%s711_s1] ss:$0 sm:$0xff] }
   0xc   :  { %510 = vmatpush3.bf16.msra.mxu0 %v509_v10  ;;  %526 = vmatprep.subr.bf16.mxu1 %v582_v3  ;;  %v383_v52 = vld [vmem:[%s712_s2] ss:$0 sm:$0xff]  ;;  %p565_p3 = por %p564_p2, %p563_p1 }
   0xd   :  { %511 = vmatprep.subr.bf16.mxu0 %v582_v3 }
   0xe   :  { %p566_p4 = pnand %p565_p3, %p559_p0 }
  0x10   :  { %513 = vmatpush3.bf16.msra.mxu0 %v512_v13 }
  0x11   :  { %514 = vmatprep.subr.bf16.mxu0 %v582_v3 }
  0x14   :  { %516 = vmatpush3.bf16.msra.mxu0 %v515_v16 }
  0x15   :  { %517 = vmatprep.subr.bf16.mxu0 %v582_v3 }
  0x18   :  { %519 = vmatpush3.bf16.msra.mxu0 %v518_v19 }
  0x19   :  { %520 = vmatprep.subr.bf16.mxu0 %v582_v3 }
  0x1c   :  { %522 = vmatpush3.bf16.msra.mxu0 %v521_v22 }
  0x1d   :  { %523 = vmatprep.subr.bf16.mxu0 %v582_v3 }
  0x20   :  { %525 = vmatpush3.bf16.msra.mxu0 %v524_v25 }
  0x21   :  { %497 = vmatprep.subr.mxu0 %v584_v6 }
  0x23   :  { %455 = vmatmul.mubr.f32.vlgmr.msra.gmra.mrb[0].mxu0 %v21_v26 }
  0x24   :  { %499 = vmatprep.mubr.msk.f32.mxu0 %vm583_vm0, %v584_v6  ;;  %498 = vmatpush3.msk.msra.mxu0 %vm116_vm1, %v111_v27 }
  0xf6   :  { %v106_v28 = vpop.f32.mrb[0].mxu0 }
  0xf7   :  { %v110_v29 = vmul.f32 0.03125, %v106_v28  ;;  %v456_v30 = vpop.f32.mrb[1].mxu0 }
  0xf9   :  { %460 = vmatmul.mubr.msk.f32.vlgmr.msra.gmra.mrb[0].mxu1 %vm112_vm2, %v110_v29 }
  0xfa   :  { %528 = vmatpush3.bf16.msra.mxu1 %v503_v4  ;;  %494 = vmatprep.mubr.msk.f32.mxu1 %vm583_vm0, %v584_v6 }
  0xfb   :  { %529 = vmatprep.subr.bf16.mxu1 %v582_v3 }
  0xfe   :  { %531 = vmatpush3.bf16.msra.mxu1 %v506_v7 }
  0xff   :  { %532 = vmatprep.subr.bf16.mxu1 %v582_v3 }
 0x102   :  { %534 = vmatpush3.bf16.msra.mxu1 %v509_v10 }
 0x103   :  { %535 = vmatprep.subr.bf16.mxu1 %v582_v3 }
 0x106   :  { %537 = vmatpush3.bf16.msra.mxu1 %v512_v13 }
 0x107   :  { %538 = vmatprep.subr.bf16.mxu1 %v582_v3 }
 0x10a   :  { %540 = vmatpush3.bf16.msra.mxu1 %v515_v16 }
 0x10b   :  { %541 = vmatprep.subr.bf16.mxu1 %v582_v3 }
 0x10e   :  { %543 = vmatpush3.bf16.msra.mxu1 %v518_v19 }
 0x10f   :  { %544 = vmatprep.subr.bf16.mxu1 %v582_v3 }
 0x112   :  { %546 = vmatpush3.bf16.msra.mxu1 %v521_v22 }
 0x113   :  { %547 = vmatprep.subr.bf16.mxu1 %v582_v3 }
 0x116   :  { %549 = vmatpush3.bf16.msra.mxu1 %v524_v25 }
 0x1cc   :  { %v186_v31 = vpop.f32.mrb[0].mxu1 }
 0x1cd   :  { %v190_v32 = vsub.f32 %v21_v26, %v186_v31  ;;  %v461_v33 = vpop.f32.mrb[1].mxu1 }
 0x1cf   :  { %v191_v34 = vmul.f32 %v190_v32, %v190_v32 }
 0x1d1   :  { %495 = vmatmul.mubr.f32.vlgmr.msra.gmra.mrb[2].mxu1 %v191_v34 }
 0x2a4   :  { %v258_v35 = vpop.f32.mrb[2].mxu1 }
 0x2a5   :  { %v262_v36 = vmul.f32 0.032258064, %v258_v35  ;;  %v496_v37 = vpop.f32.mrb[3].mxu1 }
 0x2a7   :  { %554 = vrsqrt.f32 %v262_v36  ;;  %vm265_vm3 = vcmp.eq.f32.partialorder %v262_v36, inf  ;;  %v268_v40 = vand.u32 2147483648, %v262_v36  ;;  %vm267_vm4 = vcmp.eq.f32.partialorder %v262_v36, 0.0 }
 0x2b1   :  { %v555_v38 = vpop.eup %554 }
 0x2b2   :  { %v264_v39 = vmul.f32 %v555_v38, %v262_v36 }
 0x2b4   :  { %v266_v41 = vsel %vm265_vm3, %v262_v36, %v264_v39 }
 0x2b5   :  { %v269_v42 = vsel %vm267_vm4, %v268_v40, %v266_v41 }
 0x2b6   :  { %v270_v43 = vadd.f32 0.001, %v269_v42 }
 0x2b8   :  { %556 = vrcp.f32 %v270_v43 }
 0x2c2   :  { %v557_v44 = vpop.eup %556 }
 0x2c3   :  { %v272_v45 = vmul.f32 %v557_v44, %v270_v43 }
 0x2c5   :  { %v273_v46 = vsub.f32 2.0, %v272_v45 }
 0x2c7   :  { %v274_v47 = vmul.f32 %v557_v44, %v273_v46 }
 0x2c9   :  { %500 = vmatmul.mubr.msk.f32.vlgmr.msra.gmra.mrb[2].mxu0 %vm112_vm2, %v274_v47 }
 0x39c   :  { %v344_v49 = vpop.f32.mrb[2].mxu0 }
 0x39d   :  { %v348_v50 = vmul.f32 %v344_v49, %v190_v32  ;;  %v501_v51 = vpop.f32.mrb[3].mxu0 }
 0x39f   :  { %v355_v53 = vmul.f32 %v382_v48, %v348_v50 }
 0x3a1   :  { %v362_v54 = vadd.f32 %v383_v52, %v355_v53 }
 0x3a3   :  { %363 = vst [vmem:[#allocation2] sm:$0xf] %v362_v54 }
 0x3a4   :  { %569 = shalt.err (!%p566_p4)
}
 0x3a5   :  { %s570_s9 = scalar_lea.hbm %s715_s5, 64 }
 0x3a6   :  { %p571_p5 = scmp.ne.s32.totalorder %s715_s5, %s570_s9  ;;  %p574_p6 = scmp.lt.u32.totalorder %s570_s9, %s715_s5 }
 0x3a8   :  { %p576_p7 = pnand %p574_p6, %p571_p5 }
 0x3aa   :  { %579 = shalt.err (!%p576_p7)
}
 0x3ab   :  { %373 = dma.vmem_to_hbm [thread:$0]  %s371_s6, 64, %s715_s5, [#allocation3]  }
 0x3ac   :  { %580 = dma.done.wait [#allocation3], 64  }
 0x3ad   :  { %581 = vsyncadd [#allocation3], 4294967232 }
 0x3ae   :  { %377 = vsyncpa [#allocation3], 1 }

</bundles_post_ra>
